<compile_context>
chip_gen: v6e
topology: v6e:2x2x1
jax: 0.10.0
libtpu: 0.0.40
codegen_flags: <defaults>
</compile_context>

<pallas_src>
import functools

import jax
import jax.numpy as jnp
from jax.experimental import pallas as pl
from jax.experimental.pallas import tpu as pltpu

_LANE = 128
_VMEM_LIMIT = 48 * 1024 * 1024  # v7x-safe (64 MiB physical), above v5e's 16 MiB scoped default


def _round_up(x, m):
    return (x + m - 1) // m * m


# ----------------------------------------------------------------------------
# Fake-quant math (constants baked at trace time).
# NOTE: uses an inverse-scale multiply instead of a divide; bit-exact vs. the divide
# for power-of-two thresholds (as used here).  For non-power-of-two thresholds the
# multiply may flip jnp.round at exact half-step ties relative to x/scale.
# ----------------------------------------------------------------------------

def _fake_quant_val(x, cfg):
    n_bits = int(cfg["n_bits"])
    signed = bool(cfg["signed"])
    t = float(cfg["threshold"])
    levels = 2 ** (n_bits - 1) if signed else 2 ** n_bits
    scale = t / levels
    inv_scale = levels / t
    lo = -float(levels) if signed else 0.0
    hi = float(levels - 1)
    q = jnp.clip(jnp.round(x * inv_scale), lo, hi)
    return q * scale


# ----------------------------------------------------------------------------
# Pallas kernels
# ----------------------------------------------------------------------------

def _conv_fused_kernel(p_ref, w_ref, b_ref, o_ref, *, act_quant, relu, relu_quant):
    # p_ref: (1, K, HW)  bf16  im2col patches of one batch element (lane-dense: HW on lanes)
    # w_ref: (CO, K)     bf16  PyTorch conv weight reshaped (Cout, Cin*KH*KW)
    # b_ref: (CO, 1)     f32
    # o_ref: (1, CO, HW) bf16  channel-major output (== NCHW layout when flattened)
    acc = jnp.dot(w_ref[...], p_ref[0], preferred_element_type=jnp.float32)   # (CO, HW)
    r = acc + b_ref[...]                              # fused bias
    if act_quant is not None:
        r = _fake_quant_val(r, act_quant)             # fused conv activation fake-quant
    if relu:
        r = jnp.maximum(r, 0.0)                       # fused ReLU node
        if relu_quant is not None:
            r = _fake_quant_val(r, relu_quant)        # fused ReLU activation fake-quant
    o_ref[...] = r[None].astype(o_ref.dtype)


def _fc_fused_kernel(x_ref, w_ref, b_ref, o_ref, *, act_quant):
    # x_ref: (M, K) bf16, w_ref: (K, N) bf16, b_ref: (1, N) f32, o_ref: (M, N) f32
    r = jnp.dot(x_ref[...], w_ref[...], preferred_element_type=jnp.float32)
    r = r + b_ref[...]
    if act_quant is not None:
        r = _fake_quant_val(r, act_quant)
    o_ref[...] = r.astype(o_ref.dtype)


def _fq_kernel(x_ref, o_ref, *, act_quant):
    o_ref[...] = _fake_quant_val(x_ref[...], act_quant).astype(o_ref.dtype)


# ----------------------------------------------------------------------------
# Pallas wrappers
# ----------------------------------------------------------------------------

def conv2d_fused_nchw(x_nchw, w_co_k, b_col, *, KH, KW, padding,
                      act_quant=None, relu=False, relu_quant=None,
                      out_dtype=jnp.bfloat16):
    """Fused Conv2d(stride 1) + bias [+ fq] [+ ReLU [+ fq]].

    x_nchw: (B, Cin, H, W) f32 (PyTorch layout at the model boundary)
    w_co_k: (Cout, Cin*KH*KW) bf16, b_col: (Cout, 1) f32
    returns (B, Cout, H, W) in `out_dtype` (channel-major, i.e. PyTorch NCHW).
    """
    B, Cin, H, W = x_nchw.shape
    CO, Kdim = w_co_k.shape
    HW = H * W
    xp = jnp.pad(x_nchw, ((0, 0), (0, 0), (padding, padding), (padding, padding)))
    # One-time im2col in the jitted wrapper -> lane-dense (B, Cin*KH*KW, H*W) LHS.
    # Patch axis ordered (Cin, KH, KW) to match conv_w.reshape(Cout, Cin*KH*KW).
    patches = jnp.stack(
        [xp[:, :, kh:kh + H, kw:kw + W] for kh in range(KH) for kw in range(KW)],
        axis=2)                                            # (B, Cin, KH*KW, H, W)
    patches = patches.reshape(B, Cin * KH * KW, HW).astype(jnp.bfloat16)

    kern = functools.partial(_conv_fused_kernel, act_quant=act_quant,
                             relu=relu, relu_quant=relu_quant)
    out = pl.pallas_call(
        kern,
        out_shape=jax.ShapeDtypeStruct((B, CO, HW), out_dtype),
        grid=(B,),
        in_specs=[
            pl.BlockSpec((1, Kdim, HW), lambda b: (b, 0, 0)),
            pl.BlockSpec((CO, Kdim), lambda b: (0, 0)),
            pl.BlockSpec((CO, 1), lambda b: (0, 0)),
        ],
        out_specs=pl.BlockSpec((1, CO, HW), lambda b: (b, 0, 0)),
        compiler_params=pltpu.CompilerParams(
            dimension_semantics=("parallel",),      # v7x: one batch element per TensorCore
            vmem_limit_bytes=_VMEM_LIMIT),
    )(patches, w_co_k, b_col)
    # TODO(synk): for large H/W switch the patches BlockSpec to h-banded tiles so the
    # resident VMEM footprint scales with the tile (v7x has only 64 MiB VMEM).
    return out.reshape(B, CO, H, W)


def linear_bias_fq(x, w_kn, b_row, *, act_quant=None):
    """Fused Linear: (M,K) @ (K,N) + bias [+ fake-quant], single grid point.

    The whole bf16 weight fits VMEM on every TPU generation at these sizes, so there is
    no K pipeline, no accumulator scratch and no pl.when init/finalize.
    """
    x = x if x.dtype == jnp.bfloat16 else x.astype(jnp.bfloat16)
    M, K = x.shape
    _, N = w_kn.shape
    return pl.pallas_call(
        functools.partial(_fc_fused_kernel, act_quant=act_quant),
        out_shape=jax.ShapeDtypeStruct((M, N), jnp.float32),
        in_specs=[pl.BlockSpec(memory_space=pltpu.MemorySpace.VMEM)] * 3,
        out_specs=pl.BlockSpec(memory_space=pltpu.MemorySpace.VMEM),
        compiler_params=pltpu.CompilerParams(vmem_limit_bytes=_VMEM_LIMIT),
    )(x, w_kn, b_row)


def fake_quant(x, act_quant):
    """Standalone fake-quant (fallback when a node's op cannot fuse it; unused in demo)."""
    flat = x.reshape(x.shape[0], -1) if x.ndim >= 2 else x.reshape(1, -1)
    out = pl.pallas_call(
        functools.partial(_fq_kernel, act_quant=act_quant),
        out_shape=jax.ShapeDtypeStruct(flat.shape, flat.dtype),
        in_specs=[pl.BlockSpec(memory_space=pltpu.MemorySpace.VMEM)],
        out_specs=pl.BlockSpec(memory_space=pltpu.MemorySpace.VMEM),
        compiler_params=pltpu.CompilerParams(vmem_limit_bytes=_VMEM_LIMIT),
    )(flat)
    return out.reshape(x.shape)


# ----------------------------------------------------------------------------
# Lightweight graph machinery mirroring the MCT PytorchModelBuilder
# ----------------------------------------------------------------------------

QUANTIZED = "QUANTIZED"
EDGE_SINK_INDEX = "sink_index"


class DummyPlaceHolder:
    pass


class BaseNode:
    def __init__(self, name, node_type, op_func=None, activation_quant=None):
        self.name = name
        self.type = node_type
        self.op_func = op_func
        self.activation_quant = activation_quant  # dict(threshold, n_bits, signed) or None
        self.op_call_args = []
        self.op_call_kwargs = {}

    def is_activation_quantization_enabled(self):
        return self.activation_quant is not None

    def quantize_node_output(self, t):
        return fake_quant(t, self.activation_quant)


class FunctionalNode(BaseNode):
    def __init__(self, name, fn, op_call_args=None, op_call_kwargs=None,
                 inputs_as_list=False, activation_quant=None):
        super().__init__(name, fn, op_func=fn, activation_quant=activation_quant)
        self.op_call_args = list(op_call_args or [])
        self.op_call_kwargs = dict(op_call_kwargs or {})
        self.inputs_as_list = inputs_as_list


class Edge:
    def __init__(self, source_node, dest_node, sink_index):
        self.source_node = source_node
        self.dest_node = dest_node
        self.sink_index = sink_index


class OutTensor:
    def __init__(self, node):
        self.node = node


class Graph:
    def __init__(self, nodes, edges, inputs, outputs):
        self.nodes = list(nodes)
        self.edges = list(edges)
        self._inputs = list(inputs)
        self._outputs = list(outputs)

    def get_inputs(self):
        return self._inputs

    def get_outputs(self):
        return self._outputs

    def incoming_edges(self, node, sort_by_attr=EDGE_SINK_INDEX):
        es = [e for e in self.edges if e.dest_node is node]
        return sorted(es, key=lambda e: getattr(e, sort_by_attr))

    def topological_sort(self):
        indeg = {n: 0 for n in self.nodes}
        for e in self.edges:
            indeg[e.dest_node] += 1
        order = []
        frontier = [n for n in self.nodes if indeg[n] == 0]
        while frontier:
            n = frontier.pop(0)
            order.append(n)
            for e in self.edges:
                if e.source_node is n:
                    indeg[e.dest_node] -= 1
                    if indeg[e.dest_node] == 0:
                        frontier.append(e.dest_node)
        return order


def build_input_tensors_list(node, graph, inputs, node_to_output_tensors_dict):
    if node.type == DummyPlaceHolder:
        input_tensors = [inputs[graph.get_inputs().index(node)]]
    else:
        input_tensors = []
        for ie in graph.incoming_edges(node, sort_by_attr=EDGE_SINK_INDEX):
            _input_tensors = node_to_output_tensors_dict[ie.source_node]
            input_tensors.append(_input_tensors)
        input_tensors = [t for tl in input_tensors for t in tl]
    return input_tensors


def generate_outputs(out_nodes, node_to_output_tensors_dict):
    output = []
    for n in out_nodes:
        out_tensors_of_n = node_to_output_tensors_dict.get(n)
        if len(out_tensors_of_n) > 1:
            output.append(out_tensors_of_n)
        else:
            output += out_tensors_of_n
    return output


def run_operation(n, input_tensors, op_func, mode=QUANTIZED):
    op_call_args = n.op_call_args if isinstance(n, FunctionalNode) else []
    functional_kwargs = n.op_call_kwargs if isinstance(n, FunctionalNode) else {}
    quant_cfg = n.activation_quant \
        if (mode == QUANTIZED and n.is_activation_quantization_enabled()) else None
    # Fuse the node's activation fake-quant into its Pallas op epilogue when supported
    # (avoids a separate elementwise pallas_call / HBM round trip per quantized node).
    fuse = quant_cfg is not None and getattr(op_func, "supports_fused_act_quant", False)
    if isinstance(n, FunctionalNode) and n.inputs_as_list:
        out_tensors_of_n = op_func(input_tensors, *op_call_args, **functional_kwargs)
    elif fuse:
        out_tensors_of_n = op_func(*(list(input_tensors) + list(op_call_args)),
                                   act_quant=quant_cfg, **functional_kwargs)
    else:
        out_tensors_of_n = op_func(*(list(input_tensors) + list(op_call_args)),
                                   **functional_kwargs)
    if quant_cfg is not None and not fuse:
        out_tensors_of_n = n.quantize_node_output(out_tensors_of_n)
    # TODO(synk): MIXEDPRECISION branch (torch.cat of candidates + per-candidate quant cfg)
    # has no single-kernel equivalent here; only QUANTIZED mode is reproduced.
    return out_tensors_of_n


class PallasModelBuilder:
    """JAX/Pallas mirror of PytorchModelBuilder.forward (QUANTIZED mode), jit-compiled."""

    def __init__(self, graph, mode=QUANTIZED, append2output=None):
        self.graph = graph
        self.mode = mode
        self.append2output = append2output
        self.node_sort = graph.topological_sort()
        # mirror of add_module / getattr(self, n.name)
        self._ops = {n.name: (n.op_func if n.op_func is not None else (lambda x: x))
                     for n in self.node_sort if not isinstance(n, FunctionalNode)}
        self._jit_forward = jax.jit(self._forward)

    def get_op_func(self, n):
        return n.type if isinstance(n, FunctionalNode) else self._ops[n.name]

    def _forward(self, *args):
        node_to_output_tensors_dict = dict()
        for n in self.node_sort:
            input_tensors = build_input_tensors_list(n, self.graph, args,
                                                     node_to_output_tensors_dict)
            op_func = self.get_op_func(n)
            out_tensors_of_n = run_operation(n, input_tensors, op_func, mode=self.mode)
            if isinstance(out_tensors_of_n, list):
                node_to_output_tensors_dict.update({n: out_tensors_of_n})
            else:
                node_to_output_tensors_dict.update({n: [out_tensors_of_n]})
        if self.append2output:
            outputs = generate_outputs(self.append2output, node_to_output_tensors_dict)
        else:
            outputs = generate_outputs([ot.node for ot in self.graph.get_outputs()],
                                       node_to_output_tensors_dict)
            if len(outputs) == 1:
                outputs = outputs[0]
        return outputs

    def __call__(self, *args):
        return self._jit_forward(*args)


# ----------------------------------------------------------------------------
# Synthetic graph (deterministic parameters, PyTorch-layout weights)
# ----------------------------------------------------------------------------

def build_demo_graph(key, B=2, Cin=4, H=16, W=16, Cout=8, K=3, hidden=32):
    kcw, kcb, klw, klb = jax.random.split(key, 4)
    conv_w = 0.1 * jax.random.normal(kcw, (Cout, Cin, K, K), jnp.float32)   # (Cout,Cin,KH,KW)
    conv_b = 0.1 * jax.random.normal(kcb, (Cout,), jnp.float32)
    lin_in = Cout * H * W
    fc_w = 0.02 * jax.random.normal(klw, (hidden, lin_in), jnp.float32)     # (Out,In)
    fc_b = 0.02 * jax.random.normal(klb, (hidden,), jnp.float32)

    fq_conv = dict(threshold=4.0, n_bits=8, signed=True)
    fq_relu = dict(threshold=4.0, n_bits=8, signed=False)
    fq_fc = dict(threshold=8.0, n_bits=8, signed=True)

    n_pad = _round_up(hidden, _LANE)

    # Conv weight: (Cout,Cin,KH,KW) -> (Cout, Cin*KH*KW) bf16 (matches im2col patch order).
    w_co_k = conv_w.reshape(Cout, Cin * K * K).astype(jnp.bfloat16)
    b_col = conv_b.reshape(Cout, 1).astype(jnp.float32)

    # FC weight: the conv kernel stores its output channel-major (B, Cout, H, W), so the
    # flatten equals PyTorch's NCHW flatten and NO column permutation is needed.
    # Pre-transpose to (K, N), pad N to 128 lanes (sliced off after the kernel), bf16 operand.
    fc_w_kn = jnp.pad(fc_w.T, ((0, 0), (0, n_pad - hidden))).astype(jnp.bfloat16)
    fc_b_row = jnp.pad(fc_b, (0, n_pad - hidden)).reshape(1, n_pad).astype(jnp.float32)

    def conv_op(x, act_quant=None):
        # Fused Conv2d + bias + fq_conv + ReLU + fq_relu (the ReLU node and its fake-quant
        # are fused into this producer's epilogue, mirroring MCT's conv+activation fusing).
        # Output is bf16 channel-major; post-fake-quant values are exact in bf16 here.
        return conv2d_fused_nchw(x, w_co_k, b_col, KH=K, KW=K, padding=K // 2,
                                 act_quant=act_quant, relu=True, relu_quant=fq_relu,
                                 out_dtype=jnp.bfloat16)
    conv_op.supports_fused_act_quant = True

    def relu_op(x):
        # ReLU (+ its fake-quant) already applied in the fused conv epilogue -> identity.
        return x

    def fc_op(x, act_quant=None):
        y = linear_bias_fq(x, fc_w_kn, fc_b_row, act_quant=act_quant)
        return y[:, :hidden]           # drop lane-padding outputs
    fc_op.supports_fused_act_quant = True

    in_node = BaseNode("input_1", DummyPlaceHolder)
    conv_node = BaseNode("conv1", "Conv2d", op_func=conv_op, activation_quant=fq_conv)
    # ReLU node is fused into conv's kernel -> no activation_quant / no kernel of its own.
    relu_node = BaseNode("relu1", "ReLU", op_func=relu_op, activation_quant=None)
    flatten_node = FunctionalNode(
        "flatten1",
        # Channel-major (NCHW) flatten — identical to torch.flatten(x, 1) in the reference.
        fn=lambda x, start_dim=1: x.reshape(x.shape[0], -1),
        op_call_kwargs={"start_dim": 1})
    fc_node = BaseNode("fc1", "Linear", op_func=fc_op, activation_quant=fq_fc)

    nodes = [in_node, conv_node, relu_node, flatten_node, fc_node]
    edges = [Edge(in_node, conv_node, 0),
             Edge(conv_node, relu_node, 0),
             Edge(relu_node, flatten_node, 0),
             Edge(flatten_node, fc_node, 0)]
    graph = Graph(nodes, edges, inputs=[in_node], outputs=[OutTensor(fc_node)])
    params = dict(conv_w=conv_w, conv_b=conv_b, fc_w=fc_w, fc_b=fc_b,
                  fq_conv=fq_conv, fq_relu=fq_relu, fq_fc=fq_fc)
    return graph, params


# ----------------------------------------------------------------------------
# Pure-JAX f32 reference (PyTorch semantics) for a tolerance check
# ----------------------------------------------------------------------------

def _fq_ref(x, cfg):
    levels = 2 ** (cfg["n_bits"] - 1) if cfg["signed"] else 2 ** cfg["n_bits"]
    scale = cfg["threshold"] / levels
    lo = -float(levels) if cfg["signed"] else 0.0
    hi = float(levels - 1)
    return jnp.clip(jnp.round(x / scale), lo, hi) * scale


def reference_forward(x, p):
    y = jax.lax.conv_general_dilated(
        x, p["conv_w"], window_strides=(1, 1), padding="SAME",
        dimension_numbers=("NCHW", "OIHW", "NCHW"))
    y = y + p["conv_b"].reshape(1, -1, 1, 1)
    y = _fq_ref(y, p["fq_conv"])
    y = jnp.maximum(y, 0.0)
    y = _fq_ref(y, p["fq_relu"])
    y = y.reshape(y.shape[0], -1)          # PyTorch NCHW channel-major flatten
    y = y @ p["fc_w"].T + p["fc_b"]
    return _fq_ref(y, p["fq_fc"])


if __name__ == "__main__":
    key = jax.random.PRNGKey(0)
    kx, kg = jax.random.split(key)
    x = jax.random.normal(kx, (2, 4, 16, 16), jnp.float32)   # NCHW model input

    graph, params = build_demo_graph(kg)
    model = PallasModelBuilder(graph, mode=QUANTIZED)
    out = jax.block_until_ready(model(x))

    assert out.shape == (2, 32), out.shape
    assert out.dtype == jnp.float32
    assert bool(jnp.all(jnp.isfinite(out)))

    ref = reference_forward(x, params)
    max_err = float(jnp.max(jnp.abs(out - ref)))
    # bf16 MXU operands can at most flip an output by ~one 8-bit quantization level (0.0625)
    assert max_err <= 0.25, f"max abs err vs f32 reference: {max_err}"
    print("KERNEL_OK")
</pallas_src>

<mosaic_0001>
module attributes {stable_mosaic.version = 11 : i64} {
  func.func @_conv_fused_kernel(%arg0: i32, %arg1: memref<1x36x256xbf16, #tpu.memory_space<vmem>>, %arg2: memref<8x36xbf16, #tpu.memory_space<vmem>>, %arg3: memref<8x1xf32, #tpu.memory_space<vmem>>, %arg4: memref<1x8x256xbf16, #tpu.memory_space<vmem>>) attributes {dimension_semantics = [#tpu.dimension_semantics<parallel>], iteration_bounds = array<i64: 2>, scalar_prefetch = 0 : i64, scratch_operands = 0 : i64, tpu.core_type = #tpu.core_type<tc>, window_params = [{transform_indices = @transform_0, window_bounds = array<i64: 1, 36, 256>}, {pipeline_mode = #tpu.pipeline_mode<synchronous>, transform_indices = @transform_1, window_bounds = array<i64: 8, 36>}, {pipeline_mode = #tpu.pipeline_mode<synchronous>, transform_indices = @transform_2, window_bounds = array<i64: 8, 1>}, {transform_indices = @transform_3, window_bounds = array<i64: 1, 8, 256>}]} {
    %c0 = arith.constant 0 : index
    %c0_0 = arith.constant 0 : index
    %0 = vector.load %arg2[%c0, %c0_0] : memref<8x36xbf16, #tpu.memory_space<vmem>>, vector<8x36xbf16>
    %c0_1 = arith.constant 0 : index
    %c0_2 = arith.constant 0 : index
    %c0_3 = arith.constant 0 : index
    %1 = vector.load %arg1[%c0_1, %c0_2, %c0_3] : memref<1x36x256xbf16, #tpu.memory_space<vmem>>, vector<1x36x256xbf16>
    %2 = vector.shape_cast %1 : vector<1x36x256xbf16> to vector<36x256xbf16>
    %cst = arith.constant dense<0.000000e+00> : vector<8x256xf32>
    %3 = tpu.matmul %0, %2, %cst {dimension_numbers = #tpu.dot_dimension_numbers<[1], [0], [0], [1], [0, 0, 1, 1], [], []>} : vector<8x36xbf16>, vector<36x256xbf16>, vector<8x256xf32> -> vector<8x256xf32>
    %c0_4 = arith.constant 0 : index
    %c0_5 = arith.constant 0 : index
    %4 = vector.load %arg3[%c0_4, %c0_5] : memref<8x1xf32, #tpu.memory_space<vmem>>, vector<8x1xf32>
    %5 = vector.broadcast %4 : vector<8x1xf32> to vector<8x256xf32>
    %6 = arith.addf %3, %5 : vector<8x256xf32>
    %cst_6 = arith.constant 3.200000e+01 : f32
    %7 = vector.broadcast %cst_6 : f32 to vector<8x256xf32>
    %8 = arith.mulf %6, %7 : vector<8x256xf32>
    %9 = math.roundeven %8 : vector<8x256xf32>
    %cst_7 = arith.constant -1.280000e+02 : f32
    %cst_8 = arith.constant 1.270000e+02 : f32
    %10 = vector.broadcast %cst_7 : f32 to vector<8x256xf32>
    %11 = arith.maximumf %10, %9 : vector<8x256xf32>
    %12 = vector.broadcast %cst_8 : f32 to vector<8x256xf32>
    %13 = arith.minimumf %12, %11 : vector<8x256xf32>
    %cst_9 = arith.constant 3.125000e-02 : f32
    %14 = vector.broadcast %cst_9 : f32 to vector<8x256xf32>
    %15 = arith.mulf %13, %14 : vector<8x256xf32>
    %cst_10 = arith.constant 0.000000e+00 : f32
    %16 = vector.broadcast %cst_10 : f32 to vector<8x256xf32>
    %17 = arith.maximumf %15, %16 : vector<8x256xf32>
    %cst_11 = arith.constant 6.400000e+01 : f32
    %18 = vector.broadcast %cst_11 : f32 to vector<8x256xf32>
    %19 = arith.mulf %17, %18 : vector<8x256xf32>
    %20 = math.roundeven %19 : vector<8x256xf32>
    %cst_12 = arith.constant 0.000000e+00 : f32
    %cst_13 = arith.constant 2.550000e+02 : f32
    %21 = vector.broadcast %cst_12 : f32 to vector<8x256xf32>
    %22 = arith.maximumf %21, %20 : vector<8x256xf32>
    %23 = vector.broadcast %cst_13 : f32 to vector<8x256xf32>
    %24 = arith.minimumf %23, %22 : vector<8x256xf32>
    %cst_14 = arith.constant 1.562500e-02 : f32
    %25 = vector.broadcast %cst_14 : f32 to vector<8x256xf32>
    %26 = arith.mulf %24, %25 : vector<8x256xf32>
    %27 = vector.shape_cast %26 : vector<8x256xf32> to vector<1x8x256xf32>
    %28 = arith.truncf %27 : vector<1x8x256xf32> to vector<1x8x256xbf16>
    %c0_15 = arith.constant 0 : index
    %c0_16 = arith.constant 0 : index
    %c0_17 = arith.constant 0 : index
    %29 = vector.load %arg4[%c0_15, %c0_16, %c0_17] : memref<1x8x256xbf16, #tpu.memory_space<vmem>>, vector<1x8x256xbf16>
    tpu.vector_store %arg4[%c0_15, %c0_16, %c0_17], %28 {strides = array<i32>} : memref<1x8x256xbf16, #tpu.memory_space<vmem>>, vector<1x8x256xbf16>,
    return
  }
  func.func @transform_0(%arg0: i32) -> (i32, i32, i32) {
    %c0_i32 = arith.constant 0 : i32
    %c0_i32_0 = arith.constant 0 : i32
    %c0_i32_1 = arith.constant 0 : i32
    return %arg0, %c0_i32, %c0_i32_0 : i32, i32, i32
  }
  func.func @transform_1(%arg0: i32) -> (i32, i32) {
    %c0_i32 = arith.constant 0 : i32
    %c0_i32_0 = arith.constant 0 : i32
    %c0_i32_1 = arith.constant 0 : i32
    return %c0_i32, %c0_i32_0 : i32, i32
  }
  func.func @transform_2(%arg0: i32) -> (i32, i32) {
    %c0_i32 = arith.constant 0 : i32
    %c0_i32_0 = arith.constant 0 : i32
    %c0_i32_1 = arith.constant 0 : i32
    return %c0_i32, %c0_i32_0 : i32, i32
  }
  func.func @transform_3(%arg0: i32) -> (i32, i32, i32) {
    %c0_i32 = arith.constant 0 : i32
    %c0_i32_0 = arith.constant 0 : i32
    %c0_i32_1 = arith.constant 0 : i32
    return %arg0, %c0_i32, %c0_i32_0 : i32, i32, i32
  }
}

module attributes {stable_mosaic.version = 11 : i64} {
  func.func @_fc_fused_kernel(%arg0: memref<2x2048xbf16, #tpu.memory_space<vmem>>, %arg1: memref<2048x128xbf16, #tpu.memory_space<vmem>>, %arg2: memref<1x128xf32, #tpu.memory_space<vmem>>, %arg3: memref<2x128xf32, #tpu.memory_space<vmem>>) attributes {dimension_semantics = [], scalar_prefetch = 0 : i64, scratch_operands = 0 : i64, tpu.core_type = #tpu.core_type<tc>} {
    %c0 = arith.constant 0 : index
    %c0_0 = arith.constant 0 : index
    %0 = vector.load %arg0[%c0, %c0_0] : memref<2x2048xbf16, #tpu.memory_space<vmem>>, vector<2x2048xbf16>
    %c0_1 = arith.constant 0 : index
    %c0_2 = arith.constant 0 : index
    %1 = vector.load %arg1[%c0_1, %c0_2] : memref<2048x128xbf16, #tpu.memory_space<vmem>>, vector<2048x128xbf16>
    %cst = arith.constant dense<0.000000e+00> : vector<2x128xf32>
    %2 = tpu.matmul %0, %1, %cst {dimension_numbers = #tpu.dot_dimension_numbers<[1], [0], [0], [1], [0, 0, 1, 1], [], []>} : vector<2x2048xbf16>, vector<2048x128xbf16>, vector<2x128xf32> -> vector<2x128xf32>
    %c0_3 = arith.constant 0 : index
    %c0_4 = arith.constant 0 : index
    %3 = vector.load %arg2[%c0_3, %c0_4] : memref<1x128xf32, #tpu.memory_space<vmem>>, vector<1x128xf32>
    %4 = vector.broadcast %3 : vector<1x128xf32> to vector<2x128xf32>
    %5 = arith.addf %2, %4 : vector<2x128xf32>
    %cst_5 = arith.constant 1.600000e+01 : f32
    %6 = vector.broadcast %cst_5 : f32 to vector<2x128xf32>
    %7 = arith.mulf %5, %6 : vector<2x128xf32>
    %8 = math.roundeven %7 : vector<2x128xf32>
    %cst_6 = arith.constant -1.280000e+02 : f32
    %cst_7 = arith.constant 1.270000e+02 : f32
    %9 = vector.broadcast %cst_6 : f32 to vector<2x128xf32>
    %10 = arith.maximumf %9, %8 : vector<2x128xf32>
    %11 = vector.broadcast %cst_7 : f32 to vector<2x128xf32>
    %12 = arith.minimumf %11, %10 : vector<2x128xf32>
    %cst_8 = arith.constant 6.250000e-02 : f32
    %13 = vector.broadcast %cst_8 : f32 to vector<2x128xf32>
    %14 = arith.mulf %12, %13 : vector<2x128xf32>
    %c0_9 = arith.constant 0 : index
    %c0_10 = arith.constant 0 : index
    %15 = vector.load %arg3[%c0_9, %c0_10] : memref<2x128xf32, #tpu.memory_space<vmem>>, vector<2x128xf32>
    tpu.vector_store %arg3[%c0_9, %c0_10], %14 {strides = array<i32>} : memref<2x128xf32, #tpu.memory_space<vmem>>, vector<2x128xf32>,
    return
  }
}

</mosaic_0001>

<bundles_post_ra>
// kernel: _forward.2
= control target key start
LH: loop header
LB: loop body
LE: loop exit
PB: predicated region body
PF: predicated region fallthrough
CT: control target
= control target key end

     0   :  { %s448_s12 = smov 0   ;;  %s475_s0 = inlined_call_operand.vmem [shape: bf16[2,36,256], index: 0, kind: input, shape index: {}]   ;;  %s476_s1 = inlined_call_operand.vmem [shape: bf16[8,36], index: 1, kind: input, shape index: {}]   ;;  %s477_s2 = inlined_call_operand.vmem [shape: f32[8,1], index: 2, kind: input, shape index: {}]   ;;  %s478_s3 = inlined_call_operand.vmem [shape: bf16[2,8,256], index: 3, kind: output, shape index: {}]  }
   0x1 LB: > { %s347_s13 = sadd.s32 4294967295, %s425_s12   ;;  %p351_p0 = scmp.ge.s32.totalorder %s425_s12, 1  ;;  %s425_s12 = sphi %s448_s12, %s13_s12  }
   0x2   : > { %p137_p1 = scmp.lt.s32.totalorder %s425_s12, 3 }
   0x4   : > { %p138_p2 = pnand %p351_p0, %p137_p1 }
   0x5   : > { %p161_p3 = scmp.lt.s32.totalorder (!%p138_p2), %s347_s13, 1 }
   0x6   : > { %141 = sbr.rel (%p138_p2) target bundleno = 266 (0x10a), region = 32 }
   0xb   : > { %v427_v0 = vmov 0   ;;  %v178_v1 = vld [vmem:[%s477_s2] sm:$0xff]  ;;  %s480_s13 = smov (!%p161_p3, %s347_s13), 1  ;;  %vm213_vm0 = vcmask 1041408   ;;  %vm209_vm1 = vcmask 293888  }
   0xc   : > { %252 = vmatprep.mubr.bf16.mxu0 %v427_v0  ;;  %410 = vset.pattern.permute.xlu0 %v427_v0  ;;  %s368_s16 = smul.u32 40, %s480_s13  ;;  %v172_v10 = vld [vmem:[%s476_s1] sm:$0xf]  ;;  %s366_s22 = sshll.u32 %s480_s13, 3 }
   0xd   : > { %181 = vperm.xlu0 %410, %v178_v1   ;;  %s170_s25 = scalar_lea.vmem %s478_s3, %s366_s22 }
   0xe   : > { %s165_s19 = scalar_lea.vmem %s475_s0, %s368_s16 }
   0xf   : > { %v177_v2 = vld [vmem:[%s165_s19 + $0x20] sm:$0x33]  ;;  %v413_v5 = vld [vmem:[%s165_s19 + $0x14] ss:$8 sps:$4 sm:$0xff]   ;;  %v415_v7 = vld [vmem:[%s165_s19 + $0x10] ss:$8 sps:$4 sm:$0xff]  }
  0x10   : > { %v360_v3 = vcombine.high %v177_v2, %v177_v2  ;;  %v359_v4 = vcombine.low %v177_v2, %v177_v2  ;;  %v416_v8 = vld [vmem:[%s165_s19 + $0x4] ss:$8 sps:$4 sm:$0xff]   ;;  %v418_v9 = vld [vmem:[%s165_s19] ss:$8 sps:$4 sm:$0xff]  }
  0x12   : > { %361 = vmatprep.subr.msk.bf16.mxu0 %vm213_vm0, %v360_v3  ;;  %v215_v6 = vsel %vm213_vm0, %v359_v4, 0 }
  0x13   : > { %231 = vmatpush1.bf16.msra.mxu0 %v215_v6 }
  0x14   : > { %232 = vmatprep.subr.bf16.mxu0 %v413_v5 }
  0x17   : > { %233 = vmatpush1.bf16.msra.mxu0 %v415_v7 }
  0x18   : > { %234 = vmatprep.subr.bf16.mxu0 %v416_v8 }
  0x1b   : > { %235 = vmatpush1.bf16.msra.mxu0 %v418_v9 }
  0x1e   : > { %362 = vmatmul.mubr.msk.bf16.vlgmr.msra.gmra.mxu0 %vm209_vm1, %v172_v10 }
  0x88   : > { %v182_v11 = vpop.permute.xlu0 %181 }
  0xde   : > { %v254_v12 = vpop.f32.mrf.mxu0 }
  0xdf   : > { %v255_v13 = vadd.f32 %v254_v12, %v182_v11 }
  0xe0   : > { %v256_v14 = vpop.f32.mrf.mxu0 }
  0xe1   : > { %v261_v15 = vmul.f32 32.0, %v255_v13  ;;  %v257_v16 = vadd.f32 %v256_v14, %v182_v11 }
  0xe2   : > { %v258_v17 = vpop.f32.mrf.mxu0 }
  0xe3   : > { %v371_v18 = vcvt.f32.s32 %v261_v15  ;;  %v262_v19 = vmul.f32 32.0, %v257_v16  ;;  %v369_v23 = vand.u32 2147483647, %v261_v15  ;;  %v374_v25 = vand.u32 2147483648, %v261_v15 }
  0xe4   : > { %v259_v20 = vpop.f32.mrf.mxu0 }
  0xe5   : > { %v372_v21 = vcvt.s32.f32 %v371_v18  ;;  %v379_v22 = vcvt.f32.s32 %v262_v19  ;;  %v377_v27 = vand.u32 2147483647, %v262_v19  ;;  %v382_v30 = vand.u32 2147483648, %v262_v19 }
  0xe6   : > { %vm370_vm2 = vcmp.lt.f32.partialorder %v369_v23, 8388608.0 }
  0xe7   : > { %v373_v24 = vand.u32 2147483647, %v372_v21  ;;  %v380_v26 = vcvt.s32.f32 %v379_v22  ;;  %vm378_vm3 = vcmp.lt.f32.partialorder %v377_v27, 8388608.0 }
  0xe9   : > { %v375_v28 = vor.u32 %v374_v25, %v373_v24  ;;  %v381_v29 = vand.u32 2147483647, %v380_v26 }
  0xeb   : > { %v376_v31 = vsel %vm370_vm2, %v375_v28, %v261_v15  ;;  %v383_v32 = vor.u32 %v382_v30, %v381_v29 }
  0xec   : > { %v265_v33 = vmax.f32 %v376_v31, -128.0 }
  0xed   : > { %v384_v34 = vsel %vm378_vm3, %v383_v32, %v262_v19 }
  0xee   : > { %v267_v35 = vmin.f32 %v265_v33, 127.0  ;;  %v266_v36 = vmax.f32 %v384_v34, -128.0 }
  0xf0   : > { %v269_v37 = vmul.f32 0.03125, %v267_v35  ;;  %v268_v38 = vmin.f32 %v266_v36, 127.0 }
  0xf2   : > { %v271_v39 = vmax.f32 %v269_v37, 0.0  ;;  %v270_v40 = vmul.f32 0.03125, %v268_v38 }
  0xf4   : > { %v273_v41 = vmul.f32 64.0, %v271_v39  ;;  %v272_v42 = vmax.f32 %v270_v40, 0.0 }
  0xf6   : > { %v387_v43 = vcvt.f32.s32 %v273_v41  ;;  %v274_v44 = vmul.f32 64.0, %v272_v42  ;;  %v385_v47 = vand.u32 2147483647, %v273_v41  ;;  %v390_v49 = vand.u32 2147483648, %v273_v41 }
  0xf8   : > { %v388_v45 = vcvt.s32.f32 %v387_v43  ;;  %v395_v46 = vcvt.f32.s32 %v274_v44  ;;  %v393_v51 = vand.u32 2147483647, %v274_v44  ;;  %v398_v54 = vand.u32 2147483648, %v274_v44 }
  0xf9   : > { %vm386_vm4 = vcmp.lt.f32.partialorder %v385_v47, 8388608.0 }
  0xfa   : > { %v389_v48 = vand.u32 2147483647, %v388_v45  ;;  %v396_v50 = vcvt.s32.f32 %v395_v46  ;;  %vm394_vm5 = vcmp.lt.f32.partialorder %v393_v51, 8388608.0 }
  0xfc   : > { %v391_v52 = vor.u32 %v390_v49, %v389_v48  ;;  %v397_v53 = vand.u32 2147483647, %v396_v50 }
  0xfe   : > { %v392_v55 = vsel %vm386_vm4, %v391_v52, %v273_v41  ;;  %v399_v56 = vor.u32 %v398_v54, %v397_v53 }
  0xff   : > { %v277_v57 = vmax.f32 %v392_v55, 0.0 }
 0x100   : > { %v400_v58 = vsel %vm394_vm5, %v399_v56, %v274_v44 }
 0x101   : > { %v279_v59 = vmin.f32 %v277_v57, 255.0  ;;  %v278_v60 = vmax.f32 %v400_v58, 0.0 }
 0x103   : > { %v280_v61 = vmin.f32 %v278_v60, 255.0  ;;  %v281_v62 = vmul.f32 0.015625, %v279_v59 }
 0x105   : > { %v282_v63 = vmul.f32 0.015625, %v280_v61 }
 0x107   : > { %v367_v0 = vpack.c.bf16 %v282_v63, %v281_v62 }
 0x109   : > { %291 = vst [vmem:[%s170_s25] sm:$0xff] %v367_v0 }
 0x10a PF: > { %s13_s12 = sadd.s32 1, %s425_s12  }
 0x10b   : > { %p10_p4 = scmp.ge.s32.totalorder %s13_s12, 4  }
 0x10d   :  { %12 = sbr.rel (!%p10_p4) target bundleno = 1 (0x1), region = 62 }

// kernel: _forward.3
= control target key start
LH: loop header
LB: loop body
LE: loop exit
PB: predicated region body
PF: predicated region fallthrough
CT: control target
= control target key end

     0   :  { %v287_v28 = vlaneseq  ;;  %v1972_v36 = vmov 1966171168   ;;  %s2414_s0 = inlined_call_operand.vmem [shape: bf16[2,2048], index: 0, kind: input, shape index: {}]   ;;  %s2415_s1 = inlined_call_operand.vmem [shape: bf16[2048,128], index: 1, kind: input, shape index: {}]   ;;  %s2416_s2 = inlined_call_operand.vmem [shape: f32[1,128], index: 2, kind: input, shape index: {}]   ;;  %s2417_s3 = inlined_call_operand.hbm [shape: f32[2,128], index: 3, kind: output, shape index: {}]  }
   0x1   :  { %v1820_v0 = vld [vmem:[%s2415_s1 + $0x78] sm:$0xff]   ;;  %v1824_v4 = vld [vmem:[%s2415_s1 + $0x70] sm:$0xff]   ;;  %v1828_v8 = vld [vmem:[%s2415_s1 + $0x68] sm:$0xff]   ;;  %v285_v37 = vunpack.c.l.s4 %v1972_v36 }
   0x2   :  { %v1821_v1 = vld [vmem:[%s2415_s1 + $0xf8] sm:$0xff]   ;;  %1634 = vmatprep.subr.bf16.mxu0 %v1820_v0  ;;  %v1825_v5 = vld [vmem:[%s2415_s1 + $0xf0] sm:$0xff]   ;;  %v1829_v9 = vld [vmem:[%s2415_s1 + $0xe8] sm:$0xff]   ;;  %v288_v33 = vshrl.u32 %v287_v28, 7 }
   0x3   :  { %v1822_v2 = vld [vmem:[%s2415_s1 + $0x38] sm:$0xff]   ;;  %1656 = vmatprep.subr.bf16.mxu1 %v1821_v1  ;;  %v1826_v6 = vld [vmem:[%s2415_s1 + $0x30] sm:$0xff]   ;;  %v1830_v10 = vld [vmem:[%s2415_s1 + $0x28] sm:$0xff]   ;;  %v286_v40 = vunpack.c.0.s8 %v285_v37 }
   0x4   :  { %v1823_v3 = vld [vmem:[%s2415_s1 + $0xb8] sm:$0xff]   ;;  %1635 = vmatpush3.bf16.msra.mxu0 %v1822_v2  ;;  %v1827_v7 = vld [vmem:[%s2415_s1 + $0xb0] sm:$0xff]   ;;  %v1831_v11 = vld [vmem:[%s2415_s1 + $0xa8] sm:$0xff]  }
   0x5   :  { %1657 = vmatpush3.bf16.msra.mxu1 %v1823_v3  ;;  %1636 = vmatprep.subr.bf16.mxu0 %v1824_v4  ;;  %v1832_v12 = vld [vmem:[%s2415_s1 + $0x60] sm:$0xff]   ;;  %v1836_v16 = vld [vmem:[%s2415_s1 + $0x58] sm:$0xff]   ;;  %v1840_v20 = vld [vmem:[%s2415_s1 + $0x50] sm:$0xff]   ;;  %v2099_v41 = vsub.s32 %v286_v40, %v288_v33 }
   0x6   :  { %1658 = vmatprep.subr.bf16.mxu1 %v1825_v5  ;;  %v1833_v13 = vld [vmem:[%s2415_s1 + $0xe0] sm:$0xff]   ;;  %v1837_v17 = vld [vmem:[%s2415_s1 + $0xd8] sm:$0xff]   ;;  %v1841_v21 = vld [vmem:[%s2415_s1 + $0xd0] sm:$0xff]  }
   0x7   :  { %v1834_v14 = vld [vmem:[%s2415_s1 + $0x20] sm:$0xff]   ;;  %v1838_v18 = vld [vmem:[%s2415_s1 + $0x18] sm:$0xff]   ;;  %v1842_v22 = vld [vmem:[%s2415_s1 + $0x10] sm:$0xff]  }
   0x8   :  { %1637 = vmatpush3.bf16.msra.mxu0 %v1826_v6  ;;  %v1835_v15 = vld [vmem:[%s2415_s1 + $0xa0] sm:$0xff]   ;;  %v1839_v19 = vld [vmem:[%s2415_s1 + $0x98] sm:$0xff]   ;;  %v1843_v23 = vld [vmem:[%s2415_s1 + $0x90] sm:$0xff]  }
   0x9   :  { %1659 = vmatpush3.bf16.msra.mxu1 %v1827_v7  ;;  %1638 = vmatprep.subr.bf16.mxu0 %v1828_v8  ;;  %v1844_v24 = vld [vmem:[%s2415_s1 + $0x48] sm:$0xff]   ;;  %v1848_v29 = vld [vmem:[%s2415_s1 + $0x40] sm:$0xff]   ;;  %v1853_v35 = vld [vmem:[%s2415_s1 + $0x178] sm:$0xff]  }
   0xa   :  { %1660 = vmatprep.subr.bf16.mxu1 %v1829_v9  ;;  %v1845_v25 = vld [vmem:[%s2415_s1 + $0xc8] sm:$0xff]   ;;  %v1849_v30 = vld [vmem:[%s2415_s1 + $0xc0] sm:$0xff]   ;;  %v1854_v38 = vld [vmem:[%s2415_s1 + $0x1f8] sm:$0xff]  }
   0xb   :  { %v1846_v26 = vld [vmem:[%s2415_s1 + $0x8] sm:$0xff]   ;;  %v1850_v31 = vld [vmem:[%s2415_s1] sm:$0xff]   ;;  %v1855_v48 = vld [vmem:[%s2415_s1 + $0x138] sm:$0xff]  }
   0xc   :  { %1639 = vmatpush3.bf16.msra.mxu0 %v1830_v10  ;;  %v1847_v27 = vld [vmem:[%s2415_s1 + $0x88] sm:$0xff]   ;;  %v1851_v32 = vld [vmem:[%s2415_s1 + $0x80] sm:$0xff]   ;;  %v1857_v51 = vld [vmem:[%s2415_s1 + $0x170] sm:$0xff]  }
   0xd   :  { %1661 = vmatpush3.bf16.msra.mxu1 %v1831_v11  ;;  %1640 = vmatprep.subr.bf16.mxu0 %v1832_v12  ;;  %v16_v34 = vld [vmem:[%s2414_s0] sm:$0xff]  ;;  %v1856_v53 = vld [vmem:[%s2415_s1 + $0x1b8] sm:$0xff]   ;;  %v1858_v54 = vld [vmem:[%s2415_s1 + $0x1f0] sm:$0xff]  }
   0xe   :  { %1662 = vmatprep.subr.bf16.mxu1 %v1833_v13  ;;  %v283_v39 = vcombine.high %v16_v34, %v16_v34  ;;  %v290_v42 = vrot.slane %v16_v34, %v2099_v41  ;;  %v1859_v56 = vld [vmem:[%s2415_s1 + $0x130] sm:$0xff]   ;;  %v1861_v57 = vld [vmem:[%s2415_s1 + $0x168] sm:$0xff]   ;;  %v1865_v61 = vld [vmem:[%s2415_s1 + $0x160] sm:$0xff]  }
   0xf   :  { %v1860_v58 = vld [vmem:[%s2415_s1 + $0x1b0] sm:$0xff]   ;;  %v1862_v59 = vld [vmem:[%s2415_s1 + $0x1e8] sm:$0xff]   ;;  %v1866_v63 = vld [vmem:[%s2415_s1 + $0x1e0] sm:$0xff]  }
  0x10   :  { %1641 = vmatpush3.bf16.msra.mxu0 %v1834_v14  ;;  %v2103_v43 = vrot.slane %v283_v39, %v2099_v41  ;;  %v298_v44 = vcombine.high %v290_v42, %v290_v42  ;;  %v306_v45 = vrot.slane %v290_v42, %v2099_v41  ;;  %v1863_v60 = vld [vmem:[%s2415_s1 + $0x128] sm:$0xff]   ;;  %v1867_v0 = vld [vmem:[%s2415_s1 + $0x120] sm:$0xff]   ;;  %v1869_v1 = vld [vmem:[%s2415_s1 + $0x158] sm:$0xff]  }
  0x11   :  { %1663 = vmatpush3.bf16.msra.mxu1 %v1835_v15  ;;  %1642 = vmatprep.subr.bf16.mxu0 %v1836_v16  ;;  %v1864_v62 = vld [vmem:[%s2415_s1 + $0x1a8] sm:$0xff]   ;;  %v1868_v2 = vld [vmem:[%s2415_s1 + $0x1a0] sm:$0xff]   ;;  %v1870_v3 = vld [vmem:[%s2415_s1 + $0x1d8] sm:$0xff]  }
  0x12   :  { %1664 = vmatprep.subr.bf16.mxu1 %v1837_v17  ;;  %v299_v46 = vcombine.high %v2103_v43, %v2103_v43  ;;  %v320_v47 = vrot.slane %v298_v44, %v2099_v41  ;;  %v328_v50 = vcombine.high %v306_v45, %v306_v45  ;;  %v1871_v4 = vld [vmem:[%s2415_s1 + $0x118] sm:$0xff]   ;;  %v1873_v5 = vld [vmem:[%s2415_s1 + $0x150] sm:$0xff]   ;;  %v1877_v9 = vld [vmem:[%s2415_s1 + $0x148] sm:$0xff]   ;;  %v313_v17 = vrot.slane %v2103_v43, %v2099_v41 }
  0x13   :  { %v1872_v6 = vld [vmem:[%s2415_s1 + $0x198] sm:$0xff]   ;;  %v1874_v7 = vld [vmem:[%s2415_s1 + $0x1d0] sm:$0xff]   ;;  %v1878_v11 = vld [vmem:[%s2415_s1 + $0x1c8] sm:$0xff]  }
  0x14   :  { %1643 = vmatpush3.bf16.msra.mxu0 %v1838_v18  ;;  %v327_v49 = vrot.slane %v299_v46, %v2099_v41  ;;  %1197 = vmatprep.mubr.bf16.mxu0 %v320_v47  ;;  %v330_v52 = vcombine.high %v320_v47, %v320_v47  ;;  %v1875_v8 = vld [vmem:[%s2415_s1 + $0x110] sm:$0xff]   ;;  %v1879_v12 = vld [vmem:[%s2415_s1 + $0x108] sm:$0xff]   ;;  %v1881_v13 = vld [vmem:[%s2415_s1 + $0x140] sm:$0xff]  }
  0x15   :  { %1665 = vmatpush3.bf16.msra.mxu1 %v1839_v19  ;;  %1644 = vmatprep.subr.bf16.mxu0 %v1840_v20  ;;  %v1876_v10 = vld [vmem:[%s2415_s1 + $0x190] sm:$0xff]   ;;  %v1880_v14 = vld [vmem:[%s2415_s1 + $0x188] sm:$0xff]   ;;  %v1882_v15 = vld [vmem:[%s2415_s1 + $0x1c0] sm:$0xff]  }
  0x16   :  { %1666 = vmatprep.subr.bf16.mxu1 %v1841_v21  ;;  %v331_v55 = vcombine.high %v327_v49, %v327_v49  ;;  %1237 = vmatprep.mubr.bf16.mxu1 %v330_v52  ;;  %v1883_v16 = vld [vmem:[%s2415_s1 + $0x100] sm:$0xff]   ;;  %v1885_v18 = vld [vmem:[%s2415_s1 + $0x278] sm:$0xff]   ;;  %v1892_v28 = vld [vmem:[%s2415_s1 + $0x2b0] sm:$0xff]  }
  0x17   :  { %v1884_v19 = vld [vmem:[%s2415_s1 + $0x180] sm:$0xff]   ;;  %v1886_v20 = vld [vmem:[%s2415_s1 + $0x2f8] sm:$0xff]   ;;  %v1905_v39 = vld [vmem:[%s2415_s1 + $0x250] sm:$0xff]  }
  0x18   :  { %1645 = vmatpush3.bf16.msra.mxu0 %v1842_v22  ;;  %v1887_v21 = vld [vmem:[%s2415_s1 + $0x238] sm:$0xff]   ;;  %v329_v22 = vcombine.high %v313_v17, %v313_v17  ;;  %v1898_v33 = vld [vmem:[%s2415_s1 + $0x2e0] sm:$0xff]   ;;  %v1906_v42 = vld [vmem:[%s2415_s1 + $0x2d0] sm:$0xff]  }
  0x19   :  { %1667 = vmatpush3.bf16.msra.mxu1 %v1843_v23  ;;  %1646 = vmatprep.subr.bf16.mxu0 %v1844_v24  ;;  %v1889_v23 = vld [vmem:[%s2415_s1 + $0x270] sm:$0xff]   ;;  %v1888_v24 = vld [vmem:[%s2415_s1 + $0x2b8] sm:$0xff]   ;;  %v1899_v34 = vld [vmem:[%s2415_s1 + $0x220] sm:$0xff]  }
  0x1a   :  { %1668 = vmatprep.subr.bf16.mxu1 %v1845_v25  ;;  %v1890_v25 = vld [vmem:[%s2415_s1 + $0x2f0] sm:$0xff]   ;;  %v1900_v36 = vld [vmem:[%s2415_s1 + $0x2a0] sm:$0xff]   ;;  %v1902_v37 = vld [vmem:[%s2415_s1 + $0x2d8] sm:$0xff]  }
  0x1b   :  { %v1904_v40 = vld [vmem:[%s2415_s1 + $0x298] sm:$0xff]   ;;  %v1907_v43 = vld [vmem:[%s2415_s1 + $0x210] sm:$0xff]   ;;  %v1909_v44 = vld [vmem:[%s2415_s1 + $0x248] sm:$0xff]  }
  0x1c   :  { %1647 = vmatpush3.bf16.msra.mxu0 %v1846_v26  ;;  %v1891_v26 = vld [vmem:[%s2415_s1 + $0x230] sm:$0xff]  }
  0x1d   :  { %1669 = vmatpush3.bf16.msra.mxu1 %v1847_v27  ;;  %1648 = vmatprep.subr.bf16.mxu0 %v1848_v29  ;;  %v1893_v27 = vld [vmem:[%s2415_s1 + $0x268] sm:$0xff]   ;;  %v1908_v46 = vld [vmem:[%s2415_s1 + $0x290] sm:$0xff]  }
  0x1e   :  { %1670 = vmatprep.subr.bf16.mxu1 %v1849_v30  ;;  %v1894_v29 = vld [vmem:[%s2415_s1 + $0x2e8] sm:$0xff]  }
  0x1f   :  { %v1895_v30 = vld [vmem:[%s2415_s1 + $0x228] sm:$0xff]  }
  0x20   :  { %1649 = vmatpush3.bf16.msra.mxu0 %v1850_v31  ;;  %v1897_v31 = vld [vmem:[%s2415_s1 + $0x260] sm:$0xff]  }
  0x21   :  { %1671 = vmatpush3.bf16.msra.mxu1 %v1851_v32  ;;  %1678 = vmatprep.subr.bf16.mxu0 %v1853_v35  ;;  %v1896_v32 = vld [vmem:[%s2415_s1 + $0x2a8] sm:$0xff]   ;;  %v1901_v35 = vld [vmem:[%s2415_s1 + $0x258] sm:$0xff]  }
  0x22   :  { %1700 = vmatprep.subr.bf16.mxu1 %v1854_v38  ;;  %v1903_v38 = vld [vmem:[%s2415_s1 + $0x218] sm:$0xff]  }
  0x23   :  { %1198 = vmatmul.mubr.bf16.vlgmr.msra.gmra.mxu0 %v306_v45  ;;  %v17_v45 = vld [vmem:[%s2414_s0 + $0x8] sm:$0xff] }
  0x24   :  { %1679 = vmatpush3.bf16.msra.mxu0 %v1855_v48  ;;  %1238 = vmatmul.mubr.bf16.vlgmr.msra.gmra.mxu1 %v328_v50  ;;  %v339_v47 = vrot.slane %v17_v45, %v2099_v41  ;;  %v332_v48 = vcombine.high %v17_v45, %v17_v45  ;;  %v1911_v50 = vld [vmem:[%s2415_s1 + $0x208] sm:$0xff]  }
  0x25   :  { %1680 = vmatprep.subr.bf16.mxu0 %v1857_v51  ;;  %1701 = vmatpush3.bf16.msra.mxu1 %v1856_v53  ;;  %v1913_v53 = vld [vmem:[%s2415_s1 + $0x240] sm:$0xff]  }
  0x26   :  { %1277 = vmatprep.mubr.bf16.mxu0 %v327_v49  ;;  %1702 = vmatprep.subr.bf16.mxu1 %v1858_v54  ;;  %v1910_v49 = vld [vmem:[%s2415_s1 + $0x2c8] sm:$0xff]   ;;  %v347_v51 = vcombine.high %v339_v47, %v339_v47  ;;  %v2288_v52 = vrot.slane %v332_v48, %v2099_v41 }
  0x27   :  { %1317 = vmatprep.mubr.bf16.mxu1 %v331_v55  ;;  %v1912_v54 = vld [vmem:[%s2415_s1 + $0x288] sm:$0xff]  }
  0x28   :  { %1681 = vmatpush3.bf16.msra.mxu0 %v1859_v56  ;;  %v369_v55 = vrot.slane %v347_v51, %v2099_v41  ;;  %v348_v56 = vcombine.high %v2288_v52, %v2288_v52 }
  0x29   :  { %1682 = vmatprep.subr.bf16.mxu0 %v1861_v57  ;;  %1703 = vmatpush3.bf16.msra.mxu1 %v1860_v58  ;;  %v1914_v57 = vld [vmem:[%s2415_s1 + $0x2c0] sm:$0xff]  }
  0x2a   :  { %1704 = vmatprep.subr.bf16.mxu1 %v1862_v59  ;;  %v1915_v58 = vld [vmem:[%s2415_s1 + $0x200] sm:$0xff]   ;;  %v379_v59 = vcombine.high %v369_v55, %v369_v55 }
  0x2c   :  { %1683 = vmatpush3.bf16.msra.mxu0 %v1863_v60  ;;  %v355_v60 = vrot.slane %v339_v47, %v2099_v41 }
  0x2d   :  { %1684 = vmatprep.subr.bf16.mxu0 %v1865_v61  ;;  %1705 = vmatpush3.bf16.msra.mxu1 %v1864_v62  ;;  %v1917_v61 = vld [vmem:[%s2415_s1 + $0x378] sm:$0xff]   ;;  %v1916_v62 = vld [vmem:[%s2415_s1 + $0x280] sm:$0xff]  }
  0x2e   :  { %1706 = vmatprep.subr.bf16.mxu1 %v1866_v63  ;;  %v376_v63 = vrot.slane %v348_v56, %v2099_v41 }
  0x30   :  { %1685 = vmatpush3.bf16.msra.mxu0 %v1867_v0  ;;  %v1918_v0 = vld [vmem:[%s2415_s1 + $0x3f8] sm:$0xff]  }
  0x31   :  { %1686 = vmatprep.subr.bf16.mxu0 %v1869_v1  ;;  %1707 = vmatpush3.bf16.msra.mxu1 %v1868_v2  ;;  %v1919_v1 = vld [vmem:[%s2415_s1 + $0x338] sm:$0xff]   ;;  %v377_v2 = vcombine.high %v355_v60, %v355_v60 }
  0x32   :  { %1708 = vmatprep.subr.bf16.mxu1 %v1870_v3  ;;  %v1921_v3 = vld [vmem:[%s2415_s1 + $0x370] sm:$0xff]  }
  0x34   :  { %1687 = vmatpush3.bf16.msra.mxu0 %v1871_v4  ;;  %v1920_v4 = vld [vmem:[%s2415_s1 + $0x3b8] sm:$0xff]  }
  0x35   :  { %1688 = vmatprep.subr.bf16.mxu0 %v1873_v5  ;;  %1709 = vmatpush3.bf16.msra.mxu1 %v1872_v6  ;;  %v380_v5 = vcombine.high %v376_v63, %v376_v63  ;;  %v1922_v6 = vld [vmem:[%s2415_s1 + $0x3f0] sm:$0xff]  }
  0x36   :  { %1710 = vmatprep.subr.bf16.mxu1 %v1874_v7  ;;  %v1923_v7 = vld [vmem:[%s2415_s1 + $0x330] sm:$0xff]  }
  0x38   :  { %1689 = vmatpush3.bf16.msra.mxu0 %v1875_v8  ;;  %v1925_v8 = vld [vmem:[%s2415_s1 + $0x368] sm:$0xff]  }
  0x39   :  { %1690 = vmatprep.subr.bf16.mxu0 %v1877_v9  ;;  %1711 = vmatpush3.bf16.msra.mxu1 %v1876_v10  ;;  %v1924_v9 = vld [vmem:[%s2415_s1 + $0x3b0] sm:$0xff]   ;;  %v1926_v10 = vld [vmem:[%s2415_s1 + $0x3e8] sm:$0xff]  }
  0x3a   :  { %1712 = vmatprep.subr.bf16.mxu1 %v1878_v11  ;;  %v1927_v11 = vld [vmem:[%s2415_s1 + $0x328] sm:$0xff]  }
  0x3c   :  { %1691 = vmatpush3.bf16.msra.mxu0 %v1879_v12  ;;  %v1929_v12 = vld [vmem:[%s2415_s1 + $0x360] sm:$0xff]  }
  0x3d   :  { %1692 = vmatprep.subr.bf16.mxu0 %v1881_v13  ;;  %1713 = vmatpush3.bf16.msra.mxu1 %v1880_v14  ;;  %v1928_v13 = vld [vmem:[%s2415_s1 + $0x3a8] sm:$0xff]   ;;  %v1930_v14 = vld [vmem:[%s2415_s1 + $0x3e0] sm:$0xff]  }
  0x3e   :  { %1714 = vmatprep.subr.bf16.mxu1 %v1882_v15  ;;  %v1931_v15 = vld [vmem:[%s2415_s1 + $0x320] sm:$0xff]  }
  0x40   :  { %1693 = vmatpush3.bf16.msra.mxu0 %v1883_v16  ;;  %v1933_v16 = vld [vmem:[%s2415_s1 + $0x358] sm:$0xff]  }
  0x41   :  { %1722 = vmatprep.subr.bf16.mxu0 %v1885_v18  ;;  %1715 = vmatpush3.bf16.msra.mxu1 %v1884_v19  ;;  %v1934_v18 = vld [vmem:[%s2415_s1 + $0x3d8] sm:$0xff]  }
  0x42   :  { %1744 = vmatprep.subr.bf16.mxu1 %v1886_v20  ;;  %v1935_v19 = vld [vmem:[%s2415_s1 + $0x318] sm:$0xff]   ;;  %v1937_v20 = vld [vmem:[%s2415_s1 + $0x350] sm:$0xff]  }
  0x43   :  { %1278 = vmatmul.mubr.bf16.vlgmr.msra.gmra.mxu0 %v313_v17  ;;  %v1932_v17 = vld [vmem:[%s2415_s1 + $0x3a0] sm:$0xff]  }
  0x44   :  { %1723 = vmatpush3.bf16.msra.mxu0 %v1887_v21  ;;  %1318 = vmatmul.mubr.bf16.vlgmr.msra.gmra.mxu1 %v329_v22  ;;  %v1936_v21 = vld [vmem:[%s2415_s1 + $0x398] sm:$0xff]   ;;  %v1938_v22 = vld [vmem:[%s2415_s1 + $0x3d0] sm:$0xff]  }
  0x45   :  { %1724 = vmatprep.subr.bf16.mxu0 %v1889_v23  ;;  %1745 = vmatpush3.bf16.msra.mxu1 %v1888_v24  ;;  %v1939_v23 = vld [vmem:[%s2415_s1 + $0x310] sm:$0xff]   ;;  %v1941_v24 = vld [vmem:[%s2415_s1 + $0x348] sm:$0xff]  }
  0x46   :  { %1746 = vmatprep.subr.bf16.mxu1 %v1890_v25  ;;  %1357 = vmatprep.mubr.bf16.mxu0 %v369_v55  ;;  %v1940_v25 = vld [vmem:[%s2415_s1 + $0x390] sm:$0xff]  }
  0x47   :  { %1397 = vmatprep.mubr.bf16.mxu1 %v379_v59 }
  0x48   :  { %1725 = vmatpush3.bf16.msra.mxu0 %v1891_v26 }
  0x49   :  { %1726 = vmatprep.subr.bf16.mxu0 %v1893_v27  ;;  %1747 = vmatpush3.bf16.msra.mxu1 %v1892_v28 }
  0x4a   :  { %1748 = vmatprep.subr.bf16.mxu1 %v1894_v29 }
  0x4c   :  { %1727 = vmatpush3.bf16.msra.mxu0 %v1895_v30 }
  0x4d   :  { %1728 = vmatprep.subr.bf16.mxu0 %v1897_v31  ;;  %1749 = vmatpush3.bf16.msra.mxu1 %v1896_v32 }
  0x4e   :  { %1750 = vmatprep.subr.bf16.mxu1 %v1898_v33 }
  0x50   :  { %1729 = vmatpush3.bf16.msra.mxu0 %v1899_v34 }
  0x51   :  { %1730 = vmatprep.subr.bf16.mxu0 %v1901_v35  ;;  %1751 = vmatpush3.bf16.msra.mxu1 %v1900_v36 }
  0x52   :  { %1752 = vmatprep.subr.bf16.mxu1 %v1902_v37 }
  0x54   :  { %1731 = vmatpush3.bf16.msra.mxu0 %v1903_v38 }
  0x55   :  { %1732 = vmatprep.subr.bf16.mxu0 %v1905_v39  ;;  %1753 = vmatpush3.bf16.msra.mxu1 %v1904_v40 }
  0x56   :  { %1754 = vmatprep.subr.bf16.mxu1 %v1906_v42 }
  0x58   :  { %1733 = vmatpush3.bf16.msra.mxu0 %v1907_v43 }
  0x59   :  { %1734 = vmatprep.subr.bf16.mxu0 %v1909_v44  ;;  %1755 = vmatpush3.bf16.msra.mxu1 %v1908_v46 }
  0x5a   :  { %1756 = vmatprep.subr.bf16.mxu1 %v1910_v49 }
  0x5c   :  { %1735 = vmatpush3.bf16.msra.mxu0 %v1911_v50 }
  0x5d   :  { %1736 = vmatprep.subr.bf16.mxu0 %v1913_v53  ;;  %1757 = vmatpush3.bf16.msra.mxu1 %v1912_v54 }
  0x5e   :  { %1758 = vmatprep.subr.bf16.mxu1 %v1914_v57 }
  0x60   :  { %1737 = vmatpush3.bf16.msra.mxu0 %v1915_v58 }
  0x61   :  { %1766 = vmatprep.subr.bf16.mxu0 %v1917_v61  ;;  %1759 = vmatpush3.bf16.msra.mxu1 %v1916_v62 }
  0x62   :  { %1788 = vmatprep.subr.bf16.mxu1 %v1918_v0 }
  0x63   :  { %1358 = vmatmul.mubr.bf16.vlgmr.msra.gmra.mxu0 %v355_v60 }
  0x64   :  { %1767 = vmatpush3.bf16.msra.mxu0 %v1919_v1  ;;  %1437 = vmatprep.mubr.bf16.mxu0 %v376_v63 }
  0x65   :  { %1398 = vmatmul.mubr.bf16.vlgmr.msra.gmra.mxu1 %v377_v2  ;;  %1768 = vmatprep.subr.bf16.mxu0 %v1921_v3 }
  0x66   :  { %1789 = vmatpush3.bf16.msra.mxu1 %v1920_v4  ;;  %1477 = vmatprep.mubr.bf16.mxu1 %v380_v5 }
  0x67   :  { %1790 = vmatprep.subr.bf16.mxu1 %v1922_v6 }
  0x68   :  { %1769 = vmatpush3.bf16.msra.mxu0 %v1923_v7 }
  0x69   :  { %1770 = vmatprep.subr.bf16.mxu0 %v1925_v8 }
  0x6a   :  { %1791 = vmatpush3.bf16.msra.mxu1 %v1924_v9 }
  0x6b   :  { %1792 = vmatprep.subr.bf16.mxu1 %v1926_v10 }
  0x6c   :  { %1771 = vmatpush3.bf16.msra.mxu0 %v1927_v11 }
  0x6d   :  { %1772 = vmatprep.subr.bf16.mxu0 %v1929_v12 }
  0x6e   :  { %1793 = vmatpush3.bf16.msra.mxu1 %v1928_v13 }
  0x6f   :  { %1794 = vmatprep.subr.bf16.mxu1 %v1930_v14 }
  0x70   :  { %1773 = vmatpush3.bf16.msra.mxu0 %v1931_v15 }
  0x71   :  { %1774 = vmatprep.subr.bf16.mxu0 %v1933_v16 }
  0x72   :  { %1795 = vmatpush3.bf16.msra.mxu1 %v1932_v17 }
  0x73   :  { %1796 = vmatprep.subr.bf16.mxu1 %v1934_v18 }
  0x74   :  { %1775 = vmatpush3.bf16.msra.mxu0 %v1935_v19 }
  0x75   :  { %1776 = vmatprep.subr.bf16.mxu0 %v1937_v20 }
  0x76   :  { %1797 = vmatpush3.bf16.msra.mxu1 %v1936_v21 }
  0x77   :  { %8 = vsyncpa [#allocation3], 0  ;;  %1798 = vmatprep.subr.bf16.mxu1 %v1938_v22  ;;  %v1942_v26 = vld [vmem:[%s2415_s1 + $0x3c8] sm:$0xff]   ;;  %v1945_v28 = vld [vmem:[%s2415_s1 + $0x340] sm:$0xff]   ;;  %v362_v32 = vrot.slane %v2288_v52, %v2099_v41 }
  0x78   :  { %1777 = vmatpush3.bf16.msra.mxu0 %v1939_v23  ;;  %v1943_v27 = vld [vmem:[%s2415_s1 + $0x308] sm:$0xff]   ;;  %v1946_v30 = vld [vmem:[%s2415_s1 + $0x3c0] sm:$0xff]  }
  0x79   :  { %1778 = vmatprep.subr.bf16.mxu0 %v1941_v24  ;;  %v1944_v29 = vld [vmem:[%s2415_s1 + $0x388] sm:$0xff]   ;;  %v1947_v31 = vld [vmem:[%s2415_s1 + $0x300] sm:$0xff]   ;;  %v378_v34 = vcombine.high %v362_v32, %v362_v32 }
  0x7a   :  { %1799 = vmatpush3.bf16.msra.mxu1 %v1940_v25  ;;  %v1948_v33 = vld [vmem:[%s2415_s1 + $0x380] sm:$0xff]   ;;  %s1973_s1 = smov [#allocation2]  }
  0x7b   :  { %1800 = vmatprep.subr.bf16.mxu1 %v1942_v26  ;;  %v1505_v37 = vld [vmem:[%s2416_s2] ss:$0 sm:$0xff]  ;;  %s1497_s2 = sshll.u32 %s1973_s1, 4  ;;  %s1498_s2 = int_to_ptr.vmem [resolvable:$true] %s1497_s2 }
  0x7c   :  { %1779 = vmatpush3.bf16.msra.mxu0 %v1943_v27  ;;  %s1950_s28 = scalar_lea.vmem %s1498_s2, 32  ;;  %p1955_p1 = scmp.lt.s32.totalorder %s1498_s2, %s1498_s2 }
  0x7d   :  { %1780 = vmatprep.subr.bf16.mxu0 %v1945_v28  ;;  %p1951_p0 = scmp.ne.s32.totalorder %s1498_s2, %s1950_s28  ;;  %p1956_p2 = scmp.lt.s32.totalorder %s1950_s28, %s1950_s28 }
  0x7e   :  { %1801 = vmatpush3.bf16.msra.mxu1 %v1944_v29 }
  0x7f   :  { %1802 = vmatprep.subr.bf16.mxu1 %v1946_v30  ;;  %p1957_p3 = por %p1956_p2, %p1955_p1 }
  0x80   :  { %1781 = vmatpush3.bf16.msra.mxu0 %v1947_v31 }
  0x81   :  { %p1958_p4 = pnand %p1957_p3, %p1951_p0 }
  0x82   :  { %1803 = vmatpush3.bf16.msra.mxu1 %v1948_v33 }
  0x83   :  { %1438 = vmatmul.mubr.bf16.vlgmr.msra.gmra.mxu0 %v362_v32 }
  0x85   :  { %1478 = vmatmul.mubr.bf16.vlgmr.msra.gmra.mxu1 %v378_v34 }
  0xe3   :  { %v1650_v35 = vpop.f32.mrf.mxu0 }
  0xe4   :  { %v1672_v36 = vpop.f32.mrf.mxu1 }
  0xe5   :  { %v1651_v38 = vpop.f32.mrf.mxu0 }
  0xe6   :  { %v1652_v39 = vadd.f32 %v1651_v38, %v1650_v35  ;;  %v1673_v41 = vpop.f32.mrf.mxu1 }
  0xe7   :  { %v1653_v40 = vpop.f32.mrf.mxu0  ;;  %v1674_v43 = vadd.f32 %v1673_v41, %v1672_v36 }
  0xe8   :  { %v1200_v42 = vadd.f32 %v1652_v39, %v1505_v37  ;;  %v1675_v44 = vpop.f32.mrf.mxu1 }
  0xe9   :  { %v1654_v45 = vpop.f32.mrf.mxu0 }
  0xea   :  { %v1240_v46 = vadd.f32 %v1674_v43, %v1200_v42  ;;  %v1676_v47 = vpop.f32.mrf.mxu1 }
 0x103   :  { %v1694_v48 = vpop.f32.mrf.mxu0 }
 0x104   :  { %v1716_v49 = vpop.f32.mrf.mxu1 }
 0x105   :  { %v1695_v50 = vpop.f32.mrf.mxu0 }
 0x106   :  { %v1717_v51 = vpop.f32.mrf.mxu1  ;;  %v1696_v0 = vadd.f32 %v1695_v50, %v1694_v48 }
 0x107   :  { %v1697_v52 = vpop.f32.mrf.mxu0  ;;  %v1718_v2 = vadd.f32 %v1717_v51, %v1716_v49 }
 0x108   :  { %v1719_v53 = vpop.f32.mrf.mxu1  ;;  %v1280_v1 = vadd.f32 %v1696_v0, %v1240_v46 }
 0x109   :  { %v1698_v54 = vpop.f32.mrf.mxu0 }
 0x10a   :  { %v1720_v55 = vpop.f32.mrf.mxu1  ;;  %v1320_v4 = vadd.f32 %v1718_v2, %v1280_v1 }
 0x123   :  { %v1738_v56 = vpop.f32.mrf.mxu0 }
 0x125   :  { %v1760_v57 = vpop.f32.mrf.mxu1  ;;  %v1739_v58 = vpop.f32.mrf.mxu0 }
 0x126   :  { %v1740_v3 = vadd.f32 %v1739_v58, %v1738_v56 }
 0x127   :  { %v1761_v59 = vpop.f32.mrf.mxu1  ;;  %v1741_v60 = vpop.f32.mrf.mxu0 }
 0x128   :  { %v1360_v5 = vadd.f32 %v1740_v3, %v1320_v4  ;;  %v1762_v6 = vadd.f32 %v1761_v59, %v1760_v57 }
 0x129   :  { %v1763_v61 = vpop.f32.mrf.mxu1  ;;  %v1742_v62 = vpop.f32.mrf.mxu0 }
 0x12a   :  { %v1400_v10 = vadd.f32 %v1762_v6, %v1360_v5 }
 0x12b   :  { %v1764_v63 = vpop.f32.mrf.mxu1 }
 0x143   :  { %v1782_v7 = vpop.f32.mrf.mxu0 }
 0x145   :  { %v1804_v8 = vpop.f32.mrf.mxu1  ;;  %v1783_v9 = vpop.f32.mrf.mxu0 }
 0x146   :  { %v1784_v11 = vadd.f32 %v1783_v9, %v1782_v7 }
 0x147   :  { %v1805_v12 = vpop.f32.mrf.mxu1  ;;  %v1785_v13 = vpop.f32.mrf.mxu0 }
 0x148   :  { %v1440_v14 = vadd.f32 %v1784_v11, %v1400_v10  ;;  %v1806_v15 = vadd.f32 %v1805_v12, %v1804_v8 }
 0x149   :  { %v1807_v16 = vpop.f32.mrf.mxu1  ;;  %v1786_v17 = vpop.f32.mrf.mxu0 }
 0x14a   :  { %v1480_v18 = vadd.f32 %v1806_v15, %v1440_v14 }
 0x14b   :  { %v1808_v19 = vpop.f32.mrf.mxu1 }
 0x14c   :  { %v1485_v20 = vmul.f32 16.0, %v1480_v18 }
 0x14e   :  { %v1812_v21 = vcvt.f32.s32 %v1485_v20  ;;  %v1810_v23 = vand.u32 2147483647, %v1485_v20  ;;  %v1815_v25 = vand.u32 2147483648, %v1485_v20 }
 0x150   :  { %v1813_v22 = vcvt.s32.f32 %v1812_v21  ;;  %vm1811_vm0 = vcmp.lt.f32.partialorder %v1810_v23, 8388608.0 }
 0x152   :  { %v1814_v24 = vand.u32 2147483647, %v1813_v22 }
 0x154   :  { %v1816_v26 = vor.u32 %v1815_v25, %v1814_v24 }
 0x156   :  { %v1817_v27 = vsel %vm1811_vm0, %v1816_v26, %v1485_v20 }
 0x157   :  { %v1487_v28 = vmax.f32 %v1817_v27, -128.0 }
 0x159   :  { %v1488_v29 = vmin.f32 %v1487_v28, 127.0 }
 0x15b   :  { %v1489_v30 = vmul.f32 0.0625, %v1488_v29 }
 0x15d   :  { %1490 = vst [vmem:[#allocation2] sm:$0x3] %v1489_v30 }
 0x15e   :  { %1961 = shalt.err (!%p1958_p4)
}
 0x15f   :  { %1500 = dma.vmem_to_hbm [thread:$0]  %s1498_s2, 32, %s2417_s3, [#allocation3]  }
 0x160   :  { %1970 = dma.done.wait [#allocation3], 32  }
 0x161   :  { %1971 = vsyncadd [#allocation3], 4294967264 }
 0x162   :  { %1504 = vsyncpa [#allocation3], 1 }

</bundles_post_ra>
